<compile_context>
chip_gen: v5e
topology: v5e:2x2
jax: 0.10.0
libtpu: 0.0.40
codegen_flags: <defaults>
</compile_context>

<pallas_src>
import functools
import math

import jax
import jax.numpy as jnp
from jax.experimental import pallas as pl
from jax.experimental.pallas import tpu as pltpu


def _round_up(x, m):
    return (x + m - 1) // m * m


def _attention_kernel(vl_ref, q_ref, k_ref, v_ref, o_ref,
                      m_sc, l_sc, acc_sc, *, b_tile, k_tile):
    bi = pl.program_id(0)
    ki = pl.program_id(2)
    nk = pl.num_programs(2)

    @pl.when(ki == 0)
    def _():
        m_sc[...] = jnp.full_like(m_sc, -jnp.inf)
        l_sc[...] = jnp.zeros_like(l_sc)
        acc_sc[...] = jnp.zeros_like(acc_sc)

    # Per-batch valid lengths for this batch tile: cheap scalar SMEM reads.
    vl_scalars = [vl_ref[bi * b_tile + i] for i in range(b_tile)]
    max_vl = functools.reduce(jnp.maximum, vl_scalars)
    start = ki * k_tile

    # Skip KV tiles that are entirely masked for every batch in this tile.
    # Tile 0 always runs so l_sc stays > 0 even for fully-masked rows.
    @pl.when(jnp.logical_or(ki == 0, start < max_vl))
    def _():
        # Q was pre-scaled by 1/sqrt(d) and cast to bf16 in the wrapper.
        # Batched QK^T contracting on the last dims -- no K transpose built.
        s = jnp.einsum("bqd,bkd->bqk", q_ref[...], k_ref[...],
                       preferred_element_type=jnp.float32)

        # masked_softmax: key positions >= valid_len get -1e6 before softmax.
        # Only the final where is score-sized; iota/compare operands are tiny.
        col = jax.lax.broadcasted_iota(jnp.int32, (1, 1, k_tile), 2) + start
        bidx = jax.lax.broadcasted_iota(jnp.int32, (b_tile, 1, 1), 0)
        vl_b = jnp.zeros((b_tile, 1, 1), jnp.int32)
        for i in range(b_tile):
            vl_b = jnp.where(bidx == i, vl_scalars[i], vl_b)
        s = jnp.where(col < vl_b, s, -1e6)

        # Online (flash) softmax update across KV tiles (f32 state).
        m_new = jnp.maximum(m_sc[...], s.max(axis=-1, keepdims=True))
        alpha = jnp.exp(m_sc[...] - m_new)
        p = jnp.exp(s - m_new)
        l_sc[...] = alpha * l_sc[...] + p.sum(axis=-1, keepdims=True)
        acc_sc[...] = alpha * acc_sc[...] + jnp.einsum(
            "bqk,bkd->bqd", p.astype(v_ref.dtype), v_ref[...],
            preferred_element_type=jnp.float32)
        m_sc[...] = m_new

    @pl.when(ki == nk - 1)
    def _():
        # Exact normalization once per output tile (epilogue, cheap).
        o_ref[...] = (acc_sc[...] / l_sc[...]).astype(o_ref.dtype)


def _vmem_limit_bytes(b_tile, q_tile, k_tile, d, dv_p, out_itemsize):
    in_b = 2  # bf16 inputs
    pipelined = 2 * (                       # double-buffered operands
        b_tile * q_tile * d * in_b          # Q
        + b_tile * k_tile * d * in_b        # K
        + b_tile * k_tile * dv_p * in_b     # V
        + b_tile * q_tile * dv_p * out_itemsize)  # O
    # m/l scratch pad their unit lane dim to a full 128-lane column.
    scratch = b_tile * q_tile * (2 * 128 + dv_p) * 4
    est = pipelined + scratch
    return min(64 << 20, max(16 << 20, int(est * 1.5) + (1 << 20)))


def dot_product_attention(q, k, v, valid_len=None, *,
                          b_tile=8, q_tile=256, k_tile=256):
    """q: (B, Sq, d); k: (B, Sk, d); v: (B, Sk, dv); valid_len: (B,) ints or None."""
    b, sq, d = q.shape
    _, sk, dv = v.shape
    assert k.shape == (b, sk, d)
    scale = 1.0 / math.sqrt(d)  # scale uses the true feature dim (as in torch)

    # Tile sizes clamped to the (padded) problem; seq tiles stay multiples of 8.
    b_tile = max(1, min(b_tile, b))
    q_tile = max(8, min(_round_up(q_tile, 8), _round_up(sq, 8)))
    k_tile = max(8, min(_round_up(k_tile, 8), _round_up(sk, 8)))

    b_p = _round_up(b, b_tile)
    sq_p = _round_up(sq, q_tile)
    sk_p = _round_up(sk, k_tile)
    dv_p = _round_up(dv, 128)   # lane-dense output / acc stores
    # d (contraction dim) is NOT padded: block last dim == full array dim is legal.

    # Fold 1/sqrt(d) into the one-time bf16 cast of Q (Q is KV-block-resident,
    # so an in-kernel scale would re-run on every KV step).
    qp = jnp.pad((q * scale).astype(jnp.bfloat16),
                 ((0, b_p - b), (0, sq_p - sq), (0, 0)))
    kp = jnp.pad(k.astype(jnp.bfloat16),
                 ((0, b_p - b), (0, sk_p - sk), (0, 0)))
    vp = jnp.pad(v.astype(jnp.bfloat16),
                 ((0, b_p - b), (0, sk_p - sk), (0, dv_p - dv)))

    if valid_len is None:
        vl = jnp.full((b,), sk, dtype=jnp.int32)
    else:
        vl = valid_len.astype(jnp.int32)
    # Padded batches get length 0 so their KV tiles (beyond tile 0) are skipped.
    vl = jnp.pad(vl, ((0, b_p - b),), constant_values=0)

    grid = (b_p // b_tile, sq_p // q_tile, sk_p // k_tile)
    kernel = functools.partial(_attention_kernel, b_tile=b_tile, k_tile=k_tile)
    out_dtype = q.dtype

    out = pl.pallas_call(
        kernel,
        out_shape=jax.ShapeDtypeStruct((b_p, sq_p, dv_p), out_dtype),
        grid_spec=pltpu.PrefetchScalarGridSpec(
            num_scalar_prefetch=1,          # valid_len -> SMEM
            grid=grid,
            in_specs=[
                pl.BlockSpec((b_tile, q_tile, d), lambda bi, qi, ki, vl: (bi, qi, 0)),
                pl.BlockSpec((b_tile, k_tile, d), lambda bi, qi, ki, vl: (bi, ki, 0)),
                pl.BlockSpec((b_tile, k_tile, dv_p), lambda bi, qi, ki, vl: (bi, ki, 0)),
            ],
            out_specs=pl.BlockSpec((b_tile, q_tile, dv_p),
                                   lambda bi, qi, ki, vl: (bi, qi, 0)),
            scratch_shapes=[
                pltpu.VMEM((b_tile, q_tile, 1), jnp.float32),     # running max
                pltpu.VMEM((b_tile, q_tile, 1), jnp.float32),     # running sum
                pltpu.VMEM((b_tile, q_tile, dv_p), jnp.float32),  # accumulator
            ],
        ),
        compiler_params=pltpu.CompilerParams(
            dimension_semantics=("parallel", "parallel", "arbitrary"),
            vmem_limit_bytes=_vmem_limit_bytes(
                b_tile, q_tile, k_tile, d, dv_p,
                jnp.dtype(out_dtype).itemsize),
        ),
    )(vl, qp, kp, vp)

    return out[:b, :sq, :dv]


# ------------------------- Reference (plain JAX) -------------------------

def reference_attention(q, k, v, valid_len=None):
    d = q.shape[-1]
    s = jnp.einsum("bqd,bkd->bqk", q, k) / math.sqrt(d)
    b, _, sk = s.shape
    if valid_len is None:
        vl = jnp.full((b,), sk, dtype=jnp.int32)
    else:
        vl = valid_len.astype(jnp.int32)
    col = jnp.arange(sk)[None, None, :]
    s = jnp.where(col < vl[:, None, None], s, -1e6)
    attn = jax.nn.softmax(s, axis=-1)
    return jnp.einsum("bqk,bkd->bqd", attn, v)


# ------------------------- Main -------------------------

if __name__ == "__main__":
    B, S, D = 2, 8, 32

    key = jax.random.PRNGKey(0)
    kq, kk, kv = jax.random.split(key, 3)
    q = jax.random.normal(kq, (B, S, D), dtype=jnp.float32)
    k = jax.random.normal(kk, (B, S, D), dtype=jnp.float32)
    v = jax.random.normal(kv, (B, S, D), dtype=jnp.float32)
    valid_len = jnp.array([3, 6], dtype=jnp.int32)

    out = dot_product_attention(q, k, v, valid_len)
    out = jax.block_until_ready(out)
    assert out.shape == (B, S, D)

    ref = reference_attention(q, k, v, valid_len)
    # bf16 MXU inputs (f32 accumulation) -> tolerance appropriate for bf16.
    assert jnp.allclose(out, ref, atol=2e-2, rtol=2e-2), float(
        jnp.max(jnp.abs(out - ref)))

    # Also exercise the unmasked path (valid_len=None).
    out2 = jax.block_until_ready(dot_product_attention(q, k, v, None))
    ref2 = reference_attention(q, k, v, None)
    assert jnp.allclose(out2, ref2, atol=2e-2, rtol=2e-2), float(
        jnp.max(jnp.abs(out2 - ref2)))

    print("KERNEL_OK")
</pallas_src>

<mosaic_0001>
module attributes {stable_mosaic.version = 11 : i64} {
  func.func @_attention_kernel(%arg0: i32, %arg1: i32, %arg2: i32, %arg3: memref<2xi32, #tpu.memory_space<smem>>, %arg4: memref<2x8x32xbf16, #tpu.memory_space<vmem>>, %arg5: memref<2x8x32xbf16, #tpu.memory_space<vmem>>, %arg6: memref<2x8x128xbf16, #tpu.memory_space<vmem>>, %arg7: memref<2x8x128xf32, #tpu.memory_space<vmem>>, %arg8: memref<2x8x1xf32, #tpu.memory_space<vmem>>, %arg9: memref<2x8x1xf32, #tpu.memory_space<vmem>>, %arg10: memref<2x8x128xf32, #tpu.memory_space<vmem>>) attributes {dimension_semantics = [#tpu.dimension_semantics<parallel>, #tpu.dimension_semantics<parallel>, #tpu.dimension_semantics<arbitrary>], iteration_bounds = array<i64: 1, 1, 1>, scalar_prefetch = 1 : i64, scratch_operands = 3 : i64, tpu.core_type = #tpu.core_type<tc>, window_params = [{transform_indices = @transform_0, window_bounds = array<i64: 2, 8, 32>}, {transform_indices = @transform_1, window_bounds = array<i64: 2, 8, 32>}, {transform_indices = @transform_2, window_bounds = array<i64: 2, 8, 128>}, {transform_indices = @transform_3, window_bounds = array<i64: 2, 8, 128>}]} {
    %c0_i32 = arith.constant 0 : i32
    %0 = arith.cmpi eq, %arg2, %c0_i32 : i32
    %1 = arith.extui %0 : i1 to i32
    %c0_i32_0 = arith.constant 0 : i32
    %2 = arith.cmpi ne, %1, %c0_i32_0 : i32
    scf.if %2 {
      %cst = arith.constant 0xFF800000 : f32
      %21 = vector.broadcast %cst : f32 to vector<2x8x1xf32>
      %c0 = arith.constant 0 : index
      %c0_7 = arith.constant 0 : index
      %c0_8 = arith.constant 0 : index
      %22 = vector.load %arg8[%c0, %c0_7, %c0_8] : memref<2x8x1xf32, #tpu.memory_space<vmem>>, vector<2x8x1xf32>
      tpu.vector_store %arg8[%c0, %c0_7, %c0_8], %21 {strides = array<i32>} : memref<2x8x1xf32, #tpu.memory_space<vmem>>, vector<2x8x1xf32>,
      %cst_9 = arith.constant 0.000000e+00 : f32
      %23 = vector.broadcast %cst_9 : f32 to vector<2x8x1xf32>
      %c0_10 = arith.constant 0 : index
      %c0_11 = arith.constant 0 : index
      %c0_12 = arith.constant 0 : index
      %24 = vector.load %arg9[%c0_10, %c0_11, %c0_12] : memref<2x8x1xf32, #tpu.memory_space<vmem>>, vector<2x8x1xf32>
      tpu.vector_store %arg9[%c0_10, %c0_11, %c0_12], %23 {strides = array<i32>} : memref<2x8x1xf32, #tpu.memory_space<vmem>>, vector<2x8x1xf32>,
      %cst_13 = arith.constant 0.000000e+00 : f32
      %25 = vector.broadcast %cst_13 : f32 to vector<2x8x128xf32>
      %c0_14 = arith.constant 0 : index
      %c0_15 = arith.constant 0 : index
      %c0_16 = arith.constant 0 : index
      %26 = vector.load %arg10[%c0_14, %c0_15, %c0_16] : memref<2x8x128xf32, #tpu.memory_space<vmem>>, vector<2x8x128xf32>
      tpu.vector_store %arg10[%c0_14, %c0_15, %c0_16], %25 {strides = array<i32>} : memref<2x8x128xf32, #tpu.memory_space<vmem>>, vector<2x8x128xf32>,
    } else {
    }
    %c2_i32 = arith.constant 2 : i32
    %3 = arith.muli %arg0, %c2_i32 : i32
    %c0_i32_1 = arith.constant 0 : i32
    %4 = arith.addi %3, %c0_i32_1 : i32
    %5 = arith.index_cast %4 : i32 to index
    %6 = memref.load %arg3[%5] : memref<2xi32, #tpu.memory_space<smem>>
    %c2_i32_2 = arith.constant 2 : i32
    %7 = arith.muli %arg0, %c2_i32_2 : i32
    %c1_i32 = arith.constant 1 : i32
    %8 = arith.addi %7, %c1_i32 : i32
    %9 = arith.index_cast %8 : i32 to index
    %10 = memref.load %arg3[%9] : memref<2xi32, #tpu.memory_space<smem>>
    %11 = arith.maxsi %6, %10 : i32
    %c8_i32 = arith.constant 8 : i32
    %12 = arith.muli %arg2, %c8_i32 : i32
    %c0_i32_3 = arith.constant 0 : i32
    %13 = arith.cmpi eq, %arg2, %c0_i32_3 : i32
    %14 = arith.cmpi slt, %12, %11 : i32
    %15 = arith.ori %13, %14 : i1
    %16 = arith.extui %15 : i1 to i32
    %c0_i32_4 = arith.constant 0 : i32
    %17 = arith.cmpi ne, %16, %c0_i32_4 : i32
    scf.if %17 {
      %c0 = arith.constant 0 : index
      %c0_7 = arith.constant 0 : index
      %c0_8 = arith.constant 0 : index
      %21 = vector.load %arg4[%c0, %c0_7, %c0_8] : memref<2x8x32xbf16, #tpu.memory_space<vmem>>, vector<2x8x32xbf16>
      %c0_9 = arith.constant 0 : index
      %c0_10 = arith.constant 0 : index
      %c0_11 = arith.constant 0 : index
      %22 = vector.load %arg5[%c0_9, %c0_10, %c0_11] : memref<2x8x32xbf16, #tpu.memory_space<vmem>>, vector<2x8x32xbf16>
      "tpu.trace_start"() <{level = 10 : i32, message = "bqd,bkd->bqk"}> : () -> ()
      %cst = arith.constant dense<0.000000e+00> : vector<2x8x8xf32>
      %23 = tpu.matmul %21, %22, %cst {dimension_numbers = #tpu.dot_dimension_numbers<[2], [2], [1], [1], [0, 0, 0, 1, 1, 1], [0], [0]>} : vector<2x8x32xbf16>, vector<2x8x32xbf16>, vector<2x8x8xf32> -> vector<2x8x8xf32>
      "tpu.trace_stop"() : () -> ()
      %24 = tpu.iota {dimensions = array<i32: 2>} : vector<1x1x8xi32>
      %25 = vector.broadcast %12 : i32 to vector<1x1x8xi32>
      %26 = arith.addi %24, %25 : vector<1x1x8xi32>
      %27 = tpu.iota {dimensions = array<i32: 0>} : vector<2x1x1xi32>
      %c0_i32_12 = arith.constant 0 : i32
      %28 = vector.broadcast %c0_i32_12 : i32 to vector<2x1x1xi32>
      %c0_i32_13 = arith.constant 0 : i32
      %29 = vector.broadcast %c0_i32_13 : i32 to vector<2x1x1xi32>
      %30 = arith.cmpi eq, %27, %29 : vector<2x1x1xi32>
      %31 = vector.broadcast %6 : i32 to vector<2x1x1xi32>
      %32 = arith.select %30, %31, %28 : vector<2x1x1xi1>, vector<2x1x1xi32>
      %c1_i32_14 = arith.constant 1 : i32
      %33 = vector.broadcast %c1_i32_14 : i32 to vector<2x1x1xi32>
      %34 = arith.cmpi eq, %27, %33 : vector<2x1x1xi32>
      %35 = vector.broadcast %10 : i32 to vector<2x1x1xi32>
      %36 = arith.select %34, %35, %32 : vector<2x1x1xi1>, vector<2x1x1xi32>
      %37 = vector.broadcast %26 : vector<1x1x8xi32> to vector<2x1x8xi32>
      %38 = vector.broadcast %36 : vector<2x1x1xi32> to vector<2x1x8xi32>
      %39 = arith.cmpi slt, %37, %38 : vector<2x1x8xi32>
      %cst_15 = arith.constant -1.000000e+06 : f32
      %40 = vector.shape_cast %39 : vector<2x1x8xi1> to vector<2x1x8xi1>
      %41 = vector.broadcast %40 : vector<2x1x8xi1> to vector<2x8x8xi1>
      %42 = vector.broadcast %cst_15 : f32 to vector<2x8x8xf32>
      %43 = arith.select %41, %23, %42 : vector<2x8x8xi1>, vector<2x8x8xf32>
      %c0_16 = arith.constant 0 : index
      %c0_17 = arith.constant 0 : index
      %c0_18 = arith.constant 0 : index
      %44 = vector.load %arg8[%c0_16, %c0_17, %c0_18] : memref<2x8x1xf32, #tpu.memory_space<vmem>>, vector<2x8x1xf32>
      %cst_19 = arith.constant dense<0xFF800000> : vector<2x8xf32>
      %45 = vector.multi_reduction <maximumf>, %43, %cst_19 [2] : vector<2x8x8xf32> to vector<2x8xf32>
      %46 = vector.shape_cast %45 : vector<2x8xf32> to vector<2x8x1xf32>
      %47 = arith.maximumf %44, %46 : vector<2x8x1xf32>
      %c0_20 = arith.constant 0 : index
      %c0_21 = arith.constant 0 : index
      %c0_22 = arith.constant 0 : index
      %48 = vector.load %arg8[%c0_20, %c0_21, %c0_22] : memref<2x8x1xf32, #tpu.memory_space<vmem>>, vector<2x8x1xf32>
      %49 = arith.subf %48, %47 : vector<2x8x1xf32>
      %50 = math.exp %49 : vector<2x8x1xf32>
      %51 = vector.broadcast %47 : vector<2x8x1xf32> to vector<2x8x8xf32>
      %52 = arith.subf %43, %51 : vector<2x8x8xf32>
      %53 = math.exp %52 : vector<2x8x8xf32>
      %c0_23 = arith.constant 0 : index
      %c0_24 = arith.constant 0 : index
      %c0_25 = arith.constant 0 : index
      %54 = vector.load %arg9[%c0_23, %c0_24, %c0_25] : memref<2x8x1xf32, #tpu.memory_space<vmem>>, vector<2x8x1xf32>
      %55 = arith.mulf %50, %54 : vector<2x8x1xf32>
      %cst_26 = arith.constant dense<0.000000e+00> : vector<2x8xf32>
      %56 = vector.multi_reduction <add>, %53, %cst_26 [2] : vector<2x8x8xf32> to vector<2x8xf32>
      %57 = vector.shape_cast %56 : vector<2x8xf32> to vector<2x8x1xf32>
      %58 = arith.addf %55, %57 : vector<2x8x1xf32>
      %c0_27 = arith.constant 0 : index
      %c0_28 = arith.constant 0 : index
      %c0_29 = arith.constant 0 : index
      %59 = vector.load %arg9[%c0_27, %c0_28, %c0_29] : memref<2x8x1xf32, #tpu.memory_space<vmem>>, vector<2x8x1xf32>
      tpu.vector_store %arg9[%c0_27, %c0_28, %c0_29], %58 {strides = array<i32>} : memref<2x8x1xf32, #tpu.memory_space<vmem>>, vector<2x8x1xf32>,
      %c0_30 = arith.constant 0 : index
      %c0_31 = arith.constant 0 : index
      %c0_32 = arith.constant 0 : index
      %60 = vector.load %arg10[%c0_30, %c0_31, %c0_32] : memref<2x8x128xf32, #tpu.memory_space<vmem>>, vector<2x8x128xf32>
      %61 = vector.broadcast %50 : vector<2x8x1xf32> to vector<2x8x128xf32>
      %62 = arith.mulf %61, %60 : vector<2x8x128xf32>
      %63 = arith.truncf %53 : vector<2x8x8xf32> to vector<2x8x8xbf16>
      %c0_33 = arith.constant 0 : index
      %c0_34 = arith.constant 0 : index
      %c0_35 = arith.constant 0 : index
      %64 = vector.load %arg6[%c0_33, %c0_34, %c0_35] : memref<2x8x128xbf16, #tpu.memory_space<vmem>>, vector<2x8x128xbf16>
      "tpu.trace_start"() <{level = 10 : i32, message = "bqk,bkd->bqd"}> : () -> ()
      %cst_36 = arith.constant dense<0.000000e+00> : vector<2x8x128xf32>
      %65 = tpu.matmul %63, %64, %cst_36 {dimension_numbers = #tpu.dot_dimension_numbers<[2], [1], [1], [2], [0, 0, 0, 1, 1, 2], [0], [0]>} : vector<2x8x8xbf16>, vector<2x8x128xbf16>, vector<2x8x128xf32> -> vector<2x8x128xf32>
      "tpu.trace_stop"() : () -> ()
      %66 = arith.addf %62, %65 : vector<2x8x128xf32>
      %c0_37 = arith.constant 0 : index
      %c0_38 = arith.constant 0 : index
      %c0_39 = arith.constant 0 : index
      %67 = vector.load %arg10[%c0_37, %c0_38, %c0_39] : memref<2x8x128xf32, #tpu.memory_space<vmem>>, vector<2x8x128xf32>
      tpu.vector_store %arg10[%c0_37, %c0_38, %c0_39], %66 {strides = array<i32>} : memref<2x8x128xf32, #tpu.memory_space<vmem>>, vector<2x8x128xf32>,
      %c0_40 = arith.constant 0 : index
      %c0_41 = arith.constant 0 : index
      %c0_42 = arith.constant 0 : index
      %68 = vector.load %arg8[%c0_40, %c0_41, %c0_42] : memref<2x8x1xf32, #tpu.memory_space<vmem>>, vector<2x8x1xf32>
      tpu.vector_store %arg8[%c0_40, %c0_41, %c0_42], %47 {strides = array<i32>} : memref<2x8x1xf32, #tpu.memory_space<vmem>>, vector<2x8x1xf32>,
    } else {
    }
    %c0_i32_5 = arith.constant 0 : i32
    %18 = arith.cmpi eq, %arg2, %c0_i32_5 : i32
    %19 = arith.extui %18 : i1 to i32
    %c0_i32_6 = arith.constant 0 : i32
    %20 = arith.cmpi ne, %19, %c0_i32_6 : i32
    scf.if %20 {
      %c0 = arith.constant 0 : index
      %c0_7 = arith.constant 0 : index
      %c0_8 = arith.constant 0 : index
      %21 = vector.load %arg10[%c0, %c0_7, %c0_8] : memref<2x8x128xf32, #tpu.memory_space<vmem>>, vector<2x8x128xf32>
      %c0_9 = arith.constant 0 : index
      %c0_10 = arith.constant 0 : index
      %c0_11 = arith.constant 0 : index
      %22 = vector.load %arg9[%c0_9, %c0_10, %c0_11] : memref<2x8x1xf32, #tpu.memory_space<vmem>>, vector<2x8x1xf32>
      %23 = vector.broadcast %22 : vector<2x8x1xf32> to vector<2x8x128xf32>
      %24 = arith.divf %21, %23 : vector<2x8x128xf32>
      %c0_12 = arith.constant 0 : index
      %c0_13 = arith.constant 0 : index
      %c0_14 = arith.constant 0 : index
      %25 = vector.load %arg7[%c0_12, %c0_13, %c0_14] : memref<2x8x128xf32, #tpu.memory_space<vmem>>, vector<2x8x128xf32>
      tpu.vector_store %arg7[%c0_12, %c0_13, %c0_14], %24 {strides = array<i32>} : memref<2x8x128xf32, #tpu.memory_space<vmem>>, vector<2x8x128xf32>,
    } else {
    }
    return
  }
  func.func @transform_0(%arg0: i32, %arg1: i32, %arg2: i32, %arg3: memref<2xi32, #tpu.memory_space<smem>>) -> (i32, i32, i32) {
    %c0_i32 = arith.constant 0 : i32
    %c0_i32_0 = arith.constant 0 : i32
    return %arg0, %arg1, %c0_i32 : i32, i32, i32
  }
  func.func @transform_1(%arg0: i32, %arg1: i32, %arg2: i32, %arg3: memref<2xi32, #tpu.memory_space<smem>>) -> (i32, i32, i32) {
    %c0_i32 = arith.constant 0 : i32
    %c0_i32_0 = arith.constant 0 : i32
    return %arg0, %arg2, %c0_i32 : i32, i32, i32
  }
  func.func @transform_2(%arg0: i32, %arg1: i32, %arg2: i32, %arg3: memref<2xi32, #tpu.memory_space<smem>>) -> (i32, i32, i32) {
    %c0_i32 = arith.constant 0 : i32
    %c0_i32_0 = arith.constant 0 : i32
    return %arg0, %arg2, %c0_i32 : i32, i32, i32
  }
  func.func @transform_3(%arg0: i32, %arg1: i32, %arg2: i32, %arg3: memref<2xi32, #tpu.memory_space<smem>>) -> (i32, i32, i32) {
    %c0_i32 = arith.constant 0 : i32
    %c0_i32_0 = arith.constant 0 : i32
    return %arg0, %arg1, %c0_i32 : i32, i32, i32
  }
}

</mosaic_0001>

<bundles_post_ra>
// kernel: tpu_custom_call.1
= control target key start
LH: loop header
LB: loop body
LE: loop exit
PB: predicated region body
PF: predicated region fallthrough
CT: control target
= control target key end

     0   :  { %s481_s18 = smov [#allocation6]   ;;  %s547_s0 = inlined_call_operand.hbm [shape: s32[2], index: 0, kind: input, shape index: {}]   ;;  %s548_s1 = inlined_call_operand.hbm [shape: bf16[2,8,32], index: 1, kind: input, shape index: {}]   ;;  %s549_s2 = inlined_call_operand.hbm [shape: bf16[2,8,32], index: 2, kind: input, shape index: {}]   ;;  %s550_s3 = inlined_call_operand.hbm [shape: bf16[2,8,128], index: 3, kind: input, shape index: {}]   ;;  %s551_s4 = inlined_call_operand.hbm [shape: f32[2,8,128], index: 4, kind: output, shape index: {}]  }
   0x1   :  { %s10_s17 = sshll.u32 %s547_s0, 4  ;;  %s11_s17 = int_to_ptr.hbm [resolvable:$true] %s10_s17 }
   0x2   :  { %13 = dma.hbm_to_smem %s11_s17, 16, %s481_s18, [#allocation5] }
   0x3   :  { %473 = dma.done.wait [#allocation5], 16 }
   0x4   :  { %474 = vsyncadd [#allocation5], 4294967280 }
   0x5   :  { %16 = sfence }
   0x6   :  { %17 = vsyncpa [#allocation8], 0 }
   0x7   :  { %18 = vsyncpa [#allocation11], 0 }
   0x8   :  { %19 = vsyncpa [#allocation9], 0  ;;  %s37_s21 = sshll.u32 %s549_s2, 4  ;;  %s482_s22 = smov [#allocation10]   ;;  %s38_s21 = int_to_ptr.hbm [resolvable:$true] %s37_s21 }
   0x9   :  { %s39_s23 = sshll.u32 %s482_s22, 4  ;;  %s24_s0 = sshll.u32 %s548_s1, 4  ;;  %s40_s23 = int_to_ptr.vmem [resolvable:$true] %s39_s23  ;;  %s25_s0 = int_to_ptr.hbm [resolvable:$true] %s24_s0 }
   0xa   :  { %s483_s26 = smov 64   ;;  %s484_s27 = smov 4  }
   0xb   :  { %45 = dma.hbm_to_vmem [thread:$0]  %s38_s21, 128, %s40_s23, [#allocation11], %s483_s26, %s483_s26, %s484_s27  }
   0xc   :  { %s485_s28 = smov [#allocation7]   ;;  %s50_s6 = sshll.u32 %s550_s3, 4  ;;  %s51_s6 = int_to_ptr.hbm [resolvable:$true] %s50_s6 }
   0xd   :  { %s26_s29 = sshll.u32 %s485_s28, 4  ;;  %s486_s2 = smov [#allocation12]   ;;  %s27_s29 = int_to_ptr.vmem [resolvable:$true] %s26_s29 }
   0xe   :  { %32 = dma.hbm_to_vmem [thread:$0]  %s25_s0, 128, %s27_s29, [#allocation8], %s483_s26, %s483_s26, %s484_s27  }
   0xf   :  { %s52_s7 = sshll.u32 %s486_s2, 4  ;;  %s53_s7 = int_to_ptr.vmem [resolvable:$true] %s52_s7 }
  0x10   :  { %58 = dma.hbm_to_vmem [thread:$0]  %s51_s6, 128, %s53_s7, [#allocation11], %s483_s26, %s483_s26, %s484_s27  }
  0x11   :  { %475 = dma.done.wait [#allocation8], 128  }
  0x12   :  { %476 = vsyncadd [#allocation8], 4294967168 }
  0x13   :  { %477 = dma.done.wait [#allocation11], 256  }
  0x14   :  { %478 = vsyncadd [#allocation11], 4294967040  ;;  %vm99_vm0 = vcmask 261120   ;;  %v97_v0 = vld [vmem:[#allocation10] sm:$0xf]  ;;  %vm76_vm1 = vcmask 7168   ;;  %v138_v7 = vlaneseq }
  0x15   :  { %v98_v1 = vld [vmem:[#allocation10 + $0x4] sm:$0xf]  ;;  %v104_v2 = vsel %vm99_vm0, %v97_v0, 0  ;;  %v95_v4 = vld [vmem:[#allocation7] sm:$0xf]  ;;  %v487_v6 = vmov -inf  }
  0x16   :  { %v123_v3 = vsel %vm99_vm0, %v98_v1, 0  ;;  %113 = vmatpush.bf16.xpose.msra.mxu0 %v104_v2  ;;  %v96_v5 = vld [vmem:[#allocation7 + $0x4] sm:$0xf]  ;;  %77 = vst.msk [vmem:[#allocation2] sm:$0xff] %vm76_vm1, %v487_v6  ;;  %s84_s1 = sld [smem:[#allocation6]]  ;;  %v139_v8 = vand.u32 127, %v138_v7 }
  0x17   :  { %132 = vmatpush.bf16.xpose.msra.mxu1 %v123_v3  ;;  %78 = vst.msk [vmem:[#allocation2 + $0x8] sm:$0xff] %vm76_vm1, %v487_v6  ;;  %s332_s3 = sld [smem:[#allocation6 + $0x1]]  ;;  %vm154_vm3 = vcmask 64512   ;;  %v488_v19 = vmov 0   ;;  %v489_v20 = vmov 0.0   ;;  %vm221_vm5 = vcmask 1043456  }
  0x18   :  { %350 = vset.pattern.permute.xlu1 %v488_v19  ;;  %352 = vset.pattern.permute.xlu2 %v488_v19  ;;  %79 = vst.msk [vmem:[#allocation3] sm:$0xff] %vm76_vm1, %v489_v20  ;;  %v216_v29 = vld [vmem:[#allocation12] sm:$0xf]  ;;  %v217_v31 = vld [vmem:[#allocation12 + $0x4] sm:$0xf]  ;;  %s490_s8 = smov [#allocation13]  }
  0x19   :  { %351 = vset.pattern.permute.xlu0 %v488_v19  ;;  %80 = vst.msk [vmem:[#allocation3 + $0x8] sm:$0xff] %vm76_vm1, %v489_v20  ;;  %v223_v30 = vsel %vm221_vm5, %v216_v29, 0  ;;  %v242_v32 = vsel %vm221_vm5, %v217_v31, 0  ;;  %s316_s9 = sshll.u32 %s490_s8, 4  ;;  %s318_s12 = sshll.u32 %s551_s4, 4  ;;  %s317_s9 = int_to_ptr.vmem [resolvable:$true] %s316_s9  ;;  %s319_s12 = int_to_ptr.hbm [resolvable:$true] %s318_s12 }
  0x1a   :  { %232 = vmatpush.bf16.msra.mxu2 %v223_v30  ;;  %251 = vmatpush.bf16.msra.mxu3 %v242_v32  ;;  %s491_s13 = smov 128   ;;  %s492_s14 = smov 8  }
  0x1c   :  { %v142_v9 = vstv %s84_s1 }
  0x1d   :  { %334 = vmatmul.msk.bf16.vlgmr.msra.gmra.mxu0 %vm99_vm0, %v95_v4  ;;  %vm144_vm2 = vcmp.lt.s32.totalorder %v139_v8, %v142_v9  ;;  %v143_v10 = vstv %s332_s3  ;;  %v152_v21 = vld [vmem:[#allocation2] sm:$0xff] }
  0x1e   :  { %335 = vmatmul.msk.bf16.vlgmr.msra.gmra.mxu1 %vm99_vm0, %v96_v5  ;;  %vm145_vm4 = vcmp.lt.s32.totalorder %v139_v8, %v143_v10  ;;  %v153_v25 = vld [vmem:[#allocation2 + $0x8] sm:$0xff] }
  0x1f   :  { %v185_v48 = vld [vmem:[#allocation3] sm:$0xff] }
  0x20   :  { %v186_v53 = vld [vmem:[#allocation3 + $0x8] sm:$0xff] }
  0x9a   :  { %v115_v11 = vpop.f32.mrf.mxu0 }
  0x9b   :  { %v134_v12 = vpop.f32.mrf.mxu1  ;;  %v150_v13 = vsel %vm144_vm2, %v115_v11, -1000000.0 }
  0x9c   :  { %v155_v14 = vsel %vm154_vm3, %v150_v13, -inf  ;;  %v151_v15 = vsel %vm145_vm4, %v134_v12, -1000000.0 }
  0x9d   :  { %156 = vmax.xlane.f32.xlu0 %v155_v14  ;;  %v158_v18 = vsel %vm154_vm3, %v151_v15, -inf }
  0xa2   :  { %v117_v16 = vpop.f32.mrf.mxu0 }
  0xa3   :  { %v136_v17 = vpop.f32.mrf.mxu1 }
  0xa5   :  { %159 = vmax.xlane.f32.xlu0 %v158_v18 }
 0x110   :  { %v157_v22 = vpop.xlane.xlu0 %156 }
 0x111   :  { %v161_v23 = vmax.f32 %v152_v21, %v157_v22 }
 0x113   :  { %v163_v24 = vsub.f32 %v152_v21, %v161_v23  ;;  %261 = vst.msk [vmem:[#allocation2] sm:$0xff] %vm76_vm1, %v161_v23  ;;  %171 = vperm.xlu1 %350, %v161_v23  }
 0x115   :  { %v165_v45 = vmul.f32 1.442695, %v163_v24 }
 0x118   :  { %v160_v26 = vpop.xlane.xlu0 %159 }
 0x119   :  { %v162_v27 = vmax.f32 %v153_v25, %v160_v26 }
 0x11b   :  { %v164_v28 = vsub.f32 %v153_v25, %v162_v27  ;;  %262 = vst.msk [vmem:[#allocation2 + $0x8] sm:$0xff] %vm76_vm1, %v162_v27  ;;  %176 = vperm.xlu1 %350, %v162_v27  }
 0x11d   :  { %v167_v47 = vmul.f32 1.442695, %v164_v28 }
 0x185   :  { %v172_v33 = vpop.permute.xlu1 %171 }
 0x186   :  { %v179_v34 = vsub.f32 %v150_v13, %v172_v33 }
 0x188   :  { %v181_v35 = vmul.f32 1.442695, %v179_v34 }
 0x18a   :  { %353 = vpow2.f32 %v181_v35 }
 0x18d   :  { %v177_v36 = vpop.permute.xlu1 %176 }
 0x18e   :  { %v180_v37 = vsub.f32 %v151_v15, %v177_v36 }
 0x190   :  { %v354_v38 = vpop.eup %353  ;;  %v183_v39 = vmul.f32 1.442695, %v180_v37 }
 0x191   :  { %v189_v40 = vsel %vm154_vm3, %v354_v38, 0.0  ;;  %v214_v41 = vpack.c.bf16 %v354_v38, %v354_v38 }
 0x192   :  { %355 = vpow2.f32 %v183_v39  ;;  %190 = vadd.xlane.f32.xlu2 %v189_v40 }
 0x193   :  { %336 = vmatmul.msk.bf16.vlgmr.msra.gmra.mxu2 %vm154_vm3, %v214_v41  ;;  %357 = vpow2.f32 %v165_v45 }
 0x194   :  { %359 = vpow2.f32 %v167_v47 }
 0x198   :  { %v356_v42 = vpop.eup %355 }
 0x199   :  { %v192_v43 = vsel %vm154_vm3, %v356_v42, 0.0  ;;  %v215_v44 = vpack.c.bf16 %v356_v42, %v356_v42  ;;  %v358_v46 = vpop.eup %357 }
 0x19a   :  { %193 = vadd.xlane.f32.xlu2 %v192_v43  ;;  %v187_v49 = vmul.f32 %v358_v46, %v185_v48  ;;  %v360_v52 = vpop.eup %359 }
 0x19b   :  { %337 = vmatmul.msk.bf16.vlgmr.msra.gmra.mxu3 %vm154_vm3, %v215_v44  ;;  %v188_v54 = vmul.f32 %v360_v52, %v186_v53 }
 0x1b2   :  { %204 = vperm.xlu2 %352, %v358_v46  }
 0x205   :  { %v191_v50 = vpop.xlane.xlu2 %190 }
 0x206   :  { %v195_v51 = vadd.f32 %v191_v50, %v187_v49 }
 0x208   :  { %198 = vst.msk [vmem:[#allocation3] sm:$0xff] %vm76_vm1, %v195_v51 }
 0x20d   :  { %v194_v55 = vpop.xlane.xlu2 %193 }
 0x20e   :  { %v196_v56 = vadd.f32 %v194_v55, %v188_v54 }
 0x20f   :  { %v268_v57 = vld [vmem:[#allocation3] sm:$0xff] }
 0x210   :  { %199 = vst.msk [vmem:[#allocation3 + $0x8] sm:$0xff] %vm76_vm1, %v196_v56  ;;  %272 = vperm.xlu0 %351, %v268_v57  }
 0x215   :  { %v205_v3 = vpop.permute.xlu2 %204 }
 0x216   :  { %v234_v58 = vpop.f32.mrf.mxu2  ;;  %v212_v6 = vmul.f32 0.0, %v205_v3 }
 0x217   :  { %v269_v59 = vld [vmem:[#allocation3 + $0x8] sm:$0xff] }
 0x218   :  { %277 = vperm.xlu1 %350, %v269_v59   ;;  %v257_v12 = vadd.f32 %v234_v58, %v212_v6 }
 0x21e   :  { %v236_v60 = vpop.f32.mrf.mxu2  ;;  %v253_v61 = vpop.f32.mrf.mxu3 }
 0x220   :  { %209 = vperm.xlu1 %350, %v360_v52  }
 0x226   :  { %v255_v62 = vpop.f32.mrf.mxu3 }
 0x282   :  { %v273_v63 = vpop.permute.xlu0 %272 }
 0x283   :  { %361 = vrcp.f32 %v273_v63  ;;  %v291_v5 = vand.u32 2147483648, %v273_v63  ;;  %v289_v8 = vand.u32 2147483647, %v273_v63  ;;  %vm285_vm7 = vweird.f32 %v273_v63 }
 0x285   :  { %v292_v11 = vor.u32 1.1754944e-38, %v291_v5  ;;  %vm290_vm9 = vcmp.eq.f32.partialorder %v289_v8, 8.507059e+37 }
 0x289   :  { %v362_v0 = vpop.eup %361 }
 0x28a   :  { %v281_v1 = vmul.f32 %v362_v0, %v273_v63  ;;  %v278_v2 = vpop.permute.xlu1 %277  ;;  %vm286_vm6 = vweird.f32 %v362_v0 }
 0x28b   :  { %363 = vrcp.f32 %v278_v2  ;;  %vm287_vm8 = vmor %vm285_vm7, %vm286_vm6  ;;  %v306_v19 = vand.u32 2147483648, %v278_v2  ;;  %v304_v21 = vand.u32 2147483647, %v278_v2  ;;  %vm300_vm11 = vweird.f32 %v278_v2 }
 0x28c   :  { %v282_v4 = vsub.f32 1.0, %v281_v1 }
 0x28d   :  { %v307_v24 = vor.u32 1.1754944e-38, %v306_v19  ;;  %vm305_vm13 = vcmp.eq.f32.partialorder %v304_v21, 8.507059e+37 }
 0x28e   :  { %v283_v7 = vmul.f32 %v362_v0, %v282_v4 }
 0x290   :  { %v284_v9 = vadd.f32 %v362_v0, %v283_v7 }
 0x291   :  { %v364_v10 = vpop.eup %363 }
 0x292   :  { %v288_v13 = vsel %vm287_vm8, %v362_v0, %v284_v9  ;;  %v296_v14 = vmul.f32 %v364_v10, %v278_v2  ;;  %v210_v16 = vpop.permute.xlu1 %209  ;;  %vm301_vm10 = vweird.f32 %v364_v10 }
 0x293   :  { %v293_v15 = vsel %vm290_vm9, %v292_v11, %v288_v13  ;;  %v213_v22 = vmul.f32 0.0, %v210_v16  ;;  %vm302_vm12 = vmor %vm300_vm11, %vm301_vm10 }
 0x294   :  { %v294_v17 = vmul.f32 %v293_v15, %v257_v12  ;;  %v297_v18 = vsub.f32 1.0, %v296_v14 }
 0x295   :  { %v258_v26 = vadd.f32 %v253_v61, %v213_v22 }
 0x296   :  { %310 = vst [vmem:[#allocation13] sm:$0xff] %v294_v17  ;;  %v298_v20 = vmul.f32 %v364_v10, %v297_v18 }
 0x298   :  { %v299_v23 = vadd.f32 %v364_v10, %v298_v20 }
 0x29a   :  { %v303_v25 = vsel %vm302_vm12, %v364_v10, %v299_v23 }
 0x29b   :  { %v308_v27 = vsel %vm305_vm13, %v307_v24, %v303_v25 }
 0x29c   :  { %v309_v28 = vmul.f32 %v308_v27, %v258_v26 }
 0x29e   :  { %311 = vst [vmem:[#allocation13 + $0x8] sm:$0xff] %v309_v28 }
 0x29f   :  { %324 = dma.vmem_to_hbm [thread:$0]  %s317_s9, 256, %s319_s12, [#allocation9], %s491_s13, %s491_s13, %s492_s14  }
 0x2a0   :  { %479 = dma.done.wait [#allocation9], 256  }
 0x2a1   :  { %480 = vsyncadd [#allocation9], 4294967040 }
 0x2a2   :  { %329 = vsyncpa [#allocation8], 1 }
 0x2a3   :  { %330 = vsyncpa [#allocation11], 1 }
 0x2a4   :  { %331 = vsyncpa [#allocation9], 1 }

</bundles_post_ra>
